<compile_context>
chip_gen: v7x
topology: tpu7x:2x2x1
jax: 0.10.0
libtpu: 0.0.40
codegen_flags: <defaults>
</compile_context>

<pallas_src>
import jax
import jax.numpy as jnp
from jax.experimental import pallas as pl
from jax.experimental.pallas import tpu as pltpu


def _round_up(v, m):
    return ((v + m - 1) // m) * m


def _physical_vmem_bytes():
    """Best-effort physical VMEM query; falls back to the v7x-class 64 MiB."""
    try:
        info = pltpu.get_tpu_info()
        v = getattr(info, "vmem_capacity_bytes", None)
        if v:
            return int(v)
    except Exception:
        pass
    return 64 * 1024 * 1024


def _pick_tile(dim, align, max_tile):
    """Return (tile, padded_dim) with padded_dim % tile == 0 and tile % align == 0."""
    padded = _round_up(dim, align)
    if padded <= max_tile:
        return padded, padded
    return max_tile, _round_up(dim, max_tile)


def fc_block_tiling(batch, cin, cout, *, compute_dtype=jnp.bfloat16,
                    out_dtype=jnp.float32):
    """Chip-aware tile / padding / VMEM-limit selection (done once, not per call)."""
    phys_vmem = _physical_vmem_bytes()
    if phys_vmem >= 128 * 1024 * 1024:            # v5e / v6e class
        max_m, max_n, max_k = 1024, 1024, 1024    # caps are 256-multiples
        vmem_ceiling = 96 * 1024 * 1024
    else:                                         # v7x class (64 MiB) or unknown
        max_m, max_n, max_k = 512, 512, 512
        vmem_ceiling = 40 * 1024 * 1024

    sublane = {1: 32, 2: 16, 4: 8}[jnp.dtype(compute_dtype).itemsize]
    tm, b_pad = _pick_tile(batch, sublane, max_m)   # rows (sublane-aligned)
    tk, k_pad = _pick_tile(cin, 128, max_k)         # reduction (lane-dense)
    tn, n_pad = _pick_tile(cout, 128, max_n)        # output features (lane-dense)

    gm, gn, gk = b_pad // tm, n_pad // tn, k_pad // tk

    # Guarantee >=2 parallel iterations for tiny single-tile problems so both
    # v7x TensorCores (and the v5e/v6e megacore halves) get work.
    if gm == 1 and gn == 1 and n_pad >= 256 and n_pad % 256 == 0:
        tn = n_pad // 2
        gn = 2

    c_bytes = jnp.dtype(compute_dtype).itemsize
    o_bytes = jnp.dtype(out_dtype).itemsize
    vmem_needed = (
        2 * tm * tk * c_bytes              # double-buffered x tiles
        + 2 * tk * tn * c_bytes            # double-buffered w tiles
        + 2 * 8 * tn * 4                   # shift tiles (padded to 8 sublanes)
        + 2 * tm * tn * o_bytes            # double-buffered output tiles
        + (tm * tn * 4 if gk > 1 else 0)   # f32 accumulator scratch (only if K-tiled)
    )
    vmem_limit = int(min(max(2 * vmem_needed, 4 * 1024 * 1024), vmem_ceiling))

    return dict(tm=tm, tn=tn, tk=tk, b_pad=b_pad, n_pad=n_pad, k_pad=k_pad,
                gm=gm, gn=gn, gk=gk, cout=cout, vmem_limit=vmem_limit,
                compute_dtype=compute_dtype, out_dtype=out_dtype)


def prepare_fc_block_params(w, b, gamma, beta, running_mean, running_var, cfg,
                            eps=1e-5):
    """One-time (load-time) fold + pad of parameters.

    Returns:
      w_folded: [Kpad, Npad] compute_dtype, BN scale folded into the columns.
      shift:    [1, Npad]    f32, linear bias folded into the BN shift.
    """
    cin, cout = w.shape
    scale = (gamma / jnp.sqrt(running_var + eps)).astype(jnp.float32)        # [Cout]
    shift = (beta + (b - running_mean) * scale).astype(jnp.float32)          # [Cout]
    w_folded = w.astype(jnp.float32) * scale[None, :]                        # fold scale
    w_folded = jnp.pad(w_folded, ((0, cfg["k_pad"] - cin), (0, cfg["n_pad"] - cout)))
    w_folded = w_folded.astype(cfg["compute_dtype"])
    shift = jnp.pad(shift, (0, cfg["n_pad"] - cout)).reshape(1, cfg["n_pad"])
    return w_folded, shift


def _fc_kernel_single_k(x_ref, w_ref, shift_ref, o_ref):
    """Whole reduction fits one K tile: no accumulator scratch, no pl.when."""
    y = jnp.dot(x_ref[...], w_ref[...], preferred_element_type=jnp.float32)
    o_ref[...] = jnp.maximum(y + shift_ref[...], 0.0).astype(o_ref.dtype)


def _fc_kernel_multi_k(x_ref, w_ref, shift_ref, o_ref, acc_ref):
    """K-tiled reduction: out = relu((x @ W_folded) + shift)."""
    k = pl.program_id(2)
    prod = jnp.dot(x_ref[...], w_ref[...], preferred_element_type=jnp.float32)

    @pl.when(k == 0)
    def _init():
        acc_ref[...] = prod            # `=` on first step: no zero-init pass

    @pl.when(k > 0)
    def _accumulate():
        acc_ref[...] += prod

    @pl.when(k == pl.num_programs(2) - 1)
    def _epilogue():
        o_ref[...] = jnp.maximum(acc_ref[...] + shift_ref[...], 0.0).astype(o_ref.dtype)


def fc_block_forward(x, w_folded, shift, cfg):
    """x: [B, Cin]; w_folded/shift come from prepare_fc_block_params (pre-padded)."""
    B, cin = x.shape
    tm, tn, tk = cfg["tm"], cfg["tn"], cfg["tk"]
    n_pad, k_pad = cfg["n_pad"], cfg["k_pad"]
    b_pad = _round_up(B, tm)
    gm, gn, gk = b_pad // tm, n_pad // tn, k_pad // tk

    # Activation-only padding (cheap, per-call) + bf16 cast for the MXU.
    xp = x.astype(cfg["compute_dtype"])
    if b_pad != B or k_pad != cin:
        xp = jnp.pad(xp, ((0, b_pad - B), (0, k_pad - cin)))

    c_bytes = jnp.dtype(cfg["compute_dtype"]).itemsize
    o_bytes = jnp.dtype(cfg["out_dtype"]).itemsize
    cost = pl.CostEstimate(
        flops=2 * b_pad * k_pad * n_pad,
        transcendentals=0,
        bytes_accessed=(xp.size * c_bytes + w_folded.size * c_bytes
                        + b_pad * n_pad * o_bytes + n_pad * 4),
    )

    if gk == 1:
        kernel = _fc_kernel_single_k
        dims = ("parallel", "parallel")
        grid_spec = pltpu.PrefetchScalarGridSpec(
            num_scalar_prefetch=0,
            grid=(gm, gn),
            in_specs=[
                pl.BlockSpec((tm, tk), lambda i, j: (i, 0)),   # x tile
                pl.BlockSpec((tk, tn), lambda i, j: (0, j)),   # folded-W tile
                pl.BlockSpec((1, tn), lambda i, j: (0, j)),    # shift (bias+BN)
            ],
            out_specs=pl.BlockSpec((tm, tn), lambda i, j: (i, j)),
        )
    else:
        kernel = _fc_kernel_multi_k
        dims = ("parallel", "parallel", "arbitrary")
        grid_spec = pltpu.PrefetchScalarGridSpec(
            num_scalar_prefetch=0,
            grid=(gm, gn, gk),
            in_specs=[
                pl.BlockSpec((tm, tk), lambda i, j, k: (i, k)),   # x tile
                pl.BlockSpec((tk, tn), lambda i, j, k: (k, j)),   # folded-W tile
                pl.BlockSpec((1, tn), lambda i, j, k: (0, j)),    # shift (bias+BN)
            ],
            out_specs=pl.BlockSpec((tm, tn), lambda i, j, k: (i, j)),
            scratch_shapes=[pltpu.VMEM((tm, tn), jnp.float32)],
        )

    out_padded = pl.pallas_call(
        kernel,
        out_shape=jax.ShapeDtypeStruct((b_pad, n_pad), cfg["out_dtype"]),
        grid_spec=grid_spec,
        compiler_params=pltpu.CompilerParams(
            dimension_semantics=dims,
            vmem_limit_bytes=cfg["vmem_limit"],
        ),
        cost_estimate=cost,
    )(xp, w_folded, shift)

    if b_pad == B and n_pad == cfg["cout"]:
        return out_padded
    return out_padded[:B, :cfg["cout"]]


def fc_block_reference(x, w, b, gamma, beta, running_mean, running_var, eps=1e-5):
    y = x @ w + b
    y = (y - running_mean) / jnp.sqrt(running_var + eps) * gamma + beta
    return jnp.maximum(y, 0.0)


if __name__ == "__main__":
    # Small demo shapes: Cin=96 exercises K padding (96 -> 128, gk=1 fast path),
    # Cout=256 is split into 2 N tiles so both TensorCores get work.
    B, Cin, Cout = 16, 96, 256

    key = jax.random.PRNGKey(0)
    kx, kw, kb, kg, kbe, km, kv = jax.random.split(key, 7)

    x = jax.random.normal(kx, (B, Cin), dtype=jnp.float32)

    # Synthetic nn.Linear(Cin, Cout) + BatchNorm1d(Cout) parameters (eval mode).
    w = jax.random.normal(kw, (Cin, Cout), dtype=jnp.float32) * 0.05   # [Cin, Cout]
    b = jax.random.normal(kb, (Cout,), dtype=jnp.float32) * 0.1
    gamma = 1.0 + 0.1 * jax.random.normal(kg, (Cout,), dtype=jnp.float32)
    beta = 0.1 * jax.random.normal(kbe, (Cout,), dtype=jnp.float32)
    running_mean = 0.1 * jax.random.normal(km, (Cout,), dtype=jnp.float32)
    running_var = 1.0 + 0.1 * jax.random.uniform(kv, (Cout,), dtype=jnp.float32)

    # Load-time: tiling config + one-time parameter fold/pad (NOT in the call path).
    cfg = fc_block_tiling(B, Cin, Cout)
    w_folded, shift = prepare_fc_block_params(w, b, gamma, beta,
                                              running_mean, running_var, cfg)
    w_folded = jax.block_until_ready(w_folded)

    out = fc_block_forward(x, w_folded, shift, cfg)
    out = jax.block_until_ready(out)

    ref = fc_block_reference(x, w, b, gamma, beta, running_mean, running_var)
    assert out.shape == (B, Cout)
    # bf16 MXU operands + folded bf16 weights -> bf16-level matmul accuracy vs f32 ref.
    assert jnp.allclose(out, ref, atol=2e-2, rtol=2e-2), "mismatch vs reference"

    print("KERNEL_OK")
</pallas_src>

<mosaic_0001>
module attributes {stable_mosaic.version = 11 : i64} {
  func.func @_fc_kernel_single_k(%arg0: i32, %arg1: i32, %arg2: memref<16x128xbf16, #tpu.memory_space<vmem>>, %arg3: memref<128x128xbf16, #tpu.memory_space<vmem>>, %arg4: memref<1x128xf32, #tpu.memory_space<vmem>>, %arg5: memref<16x128xf32, #tpu.memory_space<vmem>>) attributes {dimension_semantics = [#tpu.dimension_semantics<parallel>, #tpu.dimension_semantics<parallel>], iteration_bounds = array<i64: 1, 2>, scalar_prefetch = 0 : i64, scratch_operands = 0 : i64, tpu.core_type = #tpu.core_type<tc>, window_params = [{transform_indices = @transform_0, window_bounds = array<i64: 16, 128>}, {transform_indices = @transform_1, window_bounds = array<i64: 128, 128>}, {transform_indices = @transform_2, window_bounds = array<i64: 1, 128>}, {transform_indices = @transform_3, window_bounds = array<i64: 16, 128>}]} {
    %c0 = arith.constant 0 : index
    %c0_0 = arith.constant 0 : index
    %0 = vector.load %arg2[%c0, %c0_0] : memref<16x128xbf16, #tpu.memory_space<vmem>>, vector<16x128xbf16>
    %c0_1 = arith.constant 0 : index
    %c0_2 = arith.constant 0 : index
    %1 = vector.load %arg3[%c0_1, %c0_2] : memref<128x128xbf16, #tpu.memory_space<vmem>>, vector<128x128xbf16>
    %cst = arith.constant dense<0.000000e+00> : vector<16x128xf32>
    %2 = tpu.matmul %0, %1, %cst {dimension_numbers = #tpu.dot_dimension_numbers<[1], [0], [0], [1], [0, 0, 1, 1], [], []>} : vector<16x128xbf16>, vector<128x128xbf16>, vector<16x128xf32> -> vector<16x128xf32>
    %c0_3 = arith.constant 0 : index
    %c0_4 = arith.constant 0 : index
    %3 = vector.load %arg4[%c0_3, %c0_4] : memref<1x128xf32, #tpu.memory_space<vmem>>, vector<1x128xf32>
    %4 = vector.broadcast %3 : vector<1x128xf32> to vector<16x128xf32>
    %5 = arith.addf %2, %4 : vector<16x128xf32>
    %cst_5 = arith.constant 0.000000e+00 : f32
    %6 = vector.broadcast %cst_5 : f32 to vector<16x128xf32>
    %7 = arith.maximumf %5, %6 : vector<16x128xf32>
    %c0_6 = arith.constant 0 : index
    %c0_7 = arith.constant 0 : index
    %8 = vector.load %arg5[%c0_6, %c0_7] : memref<16x128xf32, #tpu.memory_space<vmem>>, vector<16x128xf32>
    tpu.vector_store %arg5[%c0_6, %c0_7], %7 {strides = array<i32>} : memref<16x128xf32, #tpu.memory_space<vmem>>, vector<16x128xf32>,
    return
  }
  func.func @transform_0(%arg0: i32, %arg1: i32) -> (i32, i32) {
    %c0_i32 = arith.constant 0 : i32
    %c0_i32_0 = arith.constant 0 : i32
    return %arg0, %c0_i32 : i32, i32
  }
  func.func @transform_1(%arg0: i32, %arg1: i32) -> (i32, i32) {
    %c0_i32 = arith.constant 0 : i32
    %c0_i32_0 = arith.constant 0 : i32
    return %c0_i32, %arg1 : i32, i32
  }
  func.func @transform_2(%arg0: i32, %arg1: i32) -> (i32, i32) {
    %c0_i32 = arith.constant 0 : i32
    %c0_i32_0 = arith.constant 0 : i32
    return %c0_i32, %arg1 : i32, i32
  }
  func.func @transform_3(%arg0: i32, %arg1: i32) -> (i32, i32) {
    %c0_i32 = arith.constant 0 : i32
    return %arg0, %arg1 : i32, i32
  }
}

</mosaic_0001>

<bundles_post_ra>
// kernel: tpu_custom_call.1
= control target key start
LH: loop header
LB: loop body
LE: loop exit
PB: predicated region body
PF: predicated region fallthrough
CT: control target
= control target key end

     0   :  { %8 = vsyncpa [#allocation3], 0  ;;  %s1040_s0 = inlined_call_operand.hbm [shape: bf16[16,128], index: 0, kind: input, shape index: {}]   ;;  %s1041_s1 = inlined_call_operand.hbm [shape: bf16[128,256], index: 1, kind: input, shape index: {}]   ;;  %s1042_s2 = inlined_call_operand.vmem [shape: f32[1,256], index: 2, kind: input, shape index: {}]   ;;  %s1043_s3 = inlined_call_operand.hbm [shape: f32[16,256], index: 3, kind: output, shape index: {}]  }
   0x1   :  { %9 = vsyncpa [#allocation6], 0 }
   0x2   :  { %11 = vsyncpa [#allocation6 + $0x1], 0 }
   0x3   :  { %12 = vsyncpa [#allocation4], 0 }
   0x4   :  { %14 = vsyncpa [#allocation4 + $0x1], 0  ;;  %s809_s12 = smov 0   ;;  %s811_s13 = smov 0  }
   0x5   :  { %s813_s14 = smov 0   ;;  %s815_s15 = smov 0  }
   0x6   :  { %s817_s16 = smov 0   ;;  %s819_s17 = smov 0  }
   0x7 LB: > { %s488_s18 = sadd.s32 4294967295, %s776_s17   ;;  %s489_s19 = sadd.s32 4294967294, %s776_s17   ;;  %s776_s17 = sphi %s819_s17, %s20_s17   ;;  %s772_s16 = sphi %s817_s16, %s1071_s16   ;;  %s768_s15 = sphi %s815_s15, %s1070_s15   ;;  %s764_s14 = sphi %s813_s14, %s1069_s14   ;;  %s760_s13 = sphi %s811_s13, %s1068_s13   ;;  %s756_s12 = sphi %s809_s12, %s1067_s12  }
   0x8   : > { %p72_p0 = scmp.ne.s32.totalorder %s764_s14, %s760_s13  ;;  %p73_p1 = scmp.eq.s32.totalorder %s776_s17, 0 }
   0x9   : > { %p78_p2 = scmp.ne.s32.totalorder %s760_s13, %s756_s12  ;;  %p846_p3 = scmp.eq.s32.totalorder %s488_s18, 0 }
   0xa   : > { %p850_p4 = por %p73_p1, %p72_p0  ;;  %p130_p5 = scmp.eq.s32.totalorder %s488_s18, 1 }
   0xb   : > { %s1051_s20 = scalar_select %p846_p3, 1, 0 }
   0xc   : > { %p856_p6 = por %p846_p3, %p78_p2  ;;  %p136_p7 = scmp.eq.s32.totalorder %s489_s19, 1 }
   0xd   : > { %p860_p8 = por %p130_p5, %p72_p0  ;;  %p490_p9 = scmp.ge.s32.totalorder %s776_s17, 1 }
   0xe   : > { %s1053_s22 = scalar_select %p856_p6, 1, 0 }
   0xf   : > { %s1054_s23 = scalar_select %p860_p8, 1, 0 }
  0x10   : > { %p865_p10 = por %p136_p7, %p78_p2  ;;  %p143_p11 = scmp.lt.s32.totalorder %s776_s17, 3 }
  0x11   : > { %s778_s26 = smov [#allocation2]   ;;  %p563_p1 = scmp.lt.s32.totalorder %s776_s17, 2 }
  0x12   : > { %s1055_s24 = scalar_select %p865_p10, 1, 0 }
  0x13   : > { %p870_p12 = pnand %p490_p9, %p143_p11  ;;  %s158_s27 = sshll.u32 %s778_s26, 4  ;;  %s874_s27 = int_to_ptr.vmem [resolvable:$true] %s158_s27 }
  0x14   : > { %p888_p2 = pnand %p563_p1, %p850_p4  ;;  %s29_s30 = sadd.s32 1, %s772_s16 }
  0x15   : > { %s1056_s25 = scalar_select %p870_p12, 1, 0 }
  0x16   : > { %p550_p13 = pneg %p870_p12  ;;  %s632_s6 = scalar_lea.hbm %s1040_s0, 128 }
  0x17   : > { %s1058_s29 = scalar_select %p888_p2, 1, 0 }
  0x18   : > { %p882_p5 = pnand %p550_p13, %p846_p3  ;;  %p633_p7 = scmp.ne.s32.totalorder %s1040_s0, %s632_s6 }
  0x19   : > { %p639_p4 = scmp.lt.u32.totalorder %s632_s6, %s1040_s0 }
  0x1a   : > { %p634_p9 = pneg %p882_p5 }
  0x1c   : > { %p635_p11 = pnand %p634_p9, %p633_p7 }
  0x1e   : > { %p636_p13 = pneg %p635_p11 }
  0x20   : > { %p641_p1 = pnand %p639_p4, %p636_p13 }
  0x22   : > { %644 = shalt.err (!%p641_p1)
}
  0x23   : > { %s645_s11 = scalar_lea.vmem %s874_s27, 128  ;;  %p653_p6 = scmp.lt.s32.totalorder %s874_s27, %s874_s27 }
  0x24   : > { %p646_p0 = scmp.ne.s32.totalorder %s874_s27, %s645_s11  ;;  %p654_p3 = scmp.lt.s32.totalorder %s645_s11, %s645_s11 }
  0x26   : > { %p648_p10 = pnand %p646_p0, %p634_p9  ;;  %p655_p12 = por %p654_p3, %p653_p6 }
  0x28   : > { %p649_p8 = pneg %p648_p10 }
  0x2a   : > { %p656_p2 = pnand %p655_p12, %p649_p8 }
  0x2c   : > { %659 = shalt.err (!%p656_p2)
}
  0x2d   : > { %s1050_s18 = smov 64   ;;  %s780_s19 = smov 4  }
  0x2e   : > { %553 = dma.hbm_to_vmem [thread:$0]  (!%p882_p5), %s1040_s0, 128, %s874_s27, [#allocation3], %s1050_s18, %s1050_s18, %s780_s19  }
  0x2f   : > { %p30_p3 = scmp.ge.s32.totalorder %s29_s30, 2  ;;  %s65_s4 = sadd.s32 1, %s764_s14 }
  0x30   : > { %s172_s5 = sand.u32 1, %s764_s14   ;;  %s494_s8 = sshll.u32 %s772_s16, 6 }
  0x31   : > { %s1073_s30 = smov (%p30_p3, %s29_s30), 0  ;;  %s493_s6 = sshll.u32 %s172_s5, 6 }
  0x32   : > { %s62_s7 = ssub.s32 %s772_s16, %s1073_s30  ;;  %s927_s10 = scalar_lea.hbm %s1041_s1, %s494_s8 }
  0x33   : > { %p63_p6 = scmp.eq.s32.totalorder %s62_s7, 0  ;;  %s176_s27 = scalar_lea.vmem [#allocation5], %s493_s6 }
  0x34   : > { %s182_s11 = sshll.u32 %s176_s27, 4  ;;  %s934_s26 = scalar_lea.sflag [#allocation6], %s172_s5  ;;  %s932_s11 = int_to_ptr.vmem [resolvable:$true] %s182_s11 }
  0x35   : > { %s930_s21 = scalar_select %p63_p6, %s764_s14, %s65_s4  }
  0x36   : > { %s660_s18 = scalar_lea.hbm %s927_s10, 1024  ;;  %p1059_p10 = scmp.ne.s32.totalorder %s1058_s29, 0 }
  0x37   : > { %p661_p8 = scmp.ne.s32.totalorder %s927_s10, %s660_s18  ;;  %s665_s28 = scalar_lea.hbm %s1041_s1, 2048 }
  0x38   : > { %p662_p12 = pneg %p1059_p10  ;;  %p666_p2 = scmp.lt.u32.totalorder %s927_s10, %s1041_s1 }
  0x39   : > { %p667_p7 = scmp.lt.u32.totalorder %s665_s28, %s660_s18  ;;  %p669_p11 = scmp.lt.u32.totalorder %s660_s18, %s927_s10 }
  0x3a   : > { %p663_p0 = pnand %p662_p12, %p661_p8 }
  0x3b   : > { %p668_p9 = por %p667_p7, %p666_p2 }
  0x3c   : > { %p664_p5 = pneg %p663_p0 }
  0x3d   : > { %p670_p13 = por %p669_p11, %p668_p9 }
  0x3f   : > { %p671_p4 = pnand %p670_p13, %p664_p5 }
  0x41   : > { %674 = shalt.err (!%p671_p4)
}
  0x42   : > { %s675_s4 = scalar_lea.vmem %s932_s11, 1024  ;;  %s781_s5 = smov [#allocation5]  }
  0x43   : > { %p676_p1 = scmp.ne.s32.totalorder %s932_s11, %s675_s4  ;;  %s680_s27 = sshll.u32 %s781_s5, 4  ;;  %s681_s27 = int_to_ptr.vmem [resolvable:$false] %s680_s27 }
  0x44   : > { %s682_s7 = scalar_lea.vmem %s681_s27, 2048  ;;  %p683_p8 = scmp.lt.s32.totalorder %s932_s11, %s681_s27 }
  0x45   : > { %p678_p3 = pnand %p676_p1, %p662_p12  ;;  %p684_p0 = scmp.lt.s32.totalorder %s682_s7, %s675_s4 }
  0x47   : > { %p679_p6 = pneg %p678_p3  ;;  %p685_p2 = por %p684_p0, %p683_p8 }
  0x49   : > { %p686_p7 = pnand %p685_p2, %p679_p6 }
  0x4b   : > { %689 = shalt.err (!%p686_p7)
}
  0x4c   : > { %s782_s18 = smov 128   ;;  %s1060_s8 = smov 64  }
  0x4d   : > { %557 = dma.hbm_to_vmem [thread:$0]  (!%p1059_p10), %s927_s10, 1024, %s932_s11, %s934_s26, %s782_s18, %s1060_s8, %s780_s19  }
  0x4e   : > { %p1061_p12 = scmp.ne.s32.totalorder %s1056_s25, 0 }
  0x4f   : > { %p1062_p5 = scmp.ne.s32.totalorder (!%p1061_p12), %s1051_s20, 0 }
  0x50   : > { %200 = sbr.rel (%p1061_p12) target bundleno = 359 (0x167), region = 32 }
  0x57   : > { %743 = dma.done.wait (%p1062_p5), [#allocation3], 128  }
  0x58   : > { %745 = vsyncadd (%p1062_p5), [#allocation3], 4294967168  ;;  %s971_s28 = sand.u32 1, %s760_s13   ;;  %p1063_p9 = scmp.ne.s32.totalorder %s1053_s22, 0 }
  0x59   : > { %s497_s29 = sshll.u32 %s971_s28, 6  ;;  %s207_s6 = scalar_lea.sflag [#allocation6], %s971_s28 }
  0x5a   : > { %s210_s9 = scalar_lea.vmem [#allocation5], %s497_s29 }
  0x5b   : > { %747 = dma.done.wait (%p1063_p9), %s207_s6, 1024  }
  0x5c   : > { %749 = vsyncadd (%p1063_p9), %s207_s6, 4294966272  ;;  %v783_v0 = vmov 0.0   ;;  %vm784_vm0 = vmmov 0   ;;  %v623_v1 = vld [vmem:[%s210_s9] sm:$0xff]   ;;  %v624_v2 = vld [vmem:[%s210_s9 + $0x8] sm:$0xff]   ;;  %p237_p10 = scmp.lt.s32.totalorder %s768_s15, 1 }
  0x5d   : > { %522 = vmatprep.subr.bf16.mxu0 %v783_v0  ;;  %538 = vmatprep.mubr.msk.bf16.mxu0 %vm784_vm0, %v783_v0  ;;  %v625_v3 = vld [vmem:[%s210_s9 + $0x10] sm:$0xff]   ;;  %v626_v4 = vld [vmem:[%s210_s9 + $0x18] sm:$0xff]   ;;  %v627_v5 = vld [vmem:[%s210_s9 + $0x20] sm:$0xff]   ;;  %s498_s22 = sshll.u32 %s971_s28, 4  ;;  %s510_s4 = sshll.u32 %s768_s15, 7 }
  0x5e   : > { %523 = vmatpush3.bf16.msra.mxu0 %v623_v1  ;;  %v628_v6 = vld [vmem:[%s210_s9 + $0x28] sm:$0xff]   ;;  %v629_v7 = vld [vmem:[%s210_s9 + $0x30] sm:$0xff]   ;;  %v630_v8 = vld [vmem:[%s210_s9 + $0x38] sm:$0xff]   ;;  %s238_s20 = scalar_select %p237_p10, %s768_s15, 1 }
  0x5f   : > { %524 = vmatprep.subr.bf16.mxu0 %v783_v0  ;;  %v631_v9 = vld [vmem:[#allocation2] sm:$0xff]   ;;  %s235_s11 = scalar_lea.vmem [#allocation7], %s498_s22  ;;  %s991_s7 = scalar_lea.hbm %s1043_s3, %s510_s4 }
  0x60   : > { %s239_s10 = scalar_lea.vmem %s1042_s2, %s238_s20  ;;  %s382_s26 = sshll.u32 %s235_s11, 4  ;;  %s986_s26 = int_to_ptr.vmem [resolvable:$true] %s382_s26 }
  0x61   : > { %v499_v10 = vld [vmem:[%s239_s10] ss:$0 sm:$0xff]  ;;  %s367_s18 = scalar_lea.sflag [#allocation4], %s971_s28  ;;  %s690_s8 = scalar_lea.vmem %s986_s26, 256 }
  0x62   : > { %525 = vmatpush3.bf16.msra.mxu0 %v624_v2  ;;  %p691_p11 = scmp.ne.s32.totalorder %s986_s26, %s690_s8  ;;  %p1064_p13 = scmp.ne.s32.totalorder %s1054_s23, 0 }
  0x63   : > { %526 = vmatprep.subr.bf16.mxu0 %v783_v0  ;;  %s785_s15 = smov [#allocation7]  }
  0x64   : > { %p692_p4 = pnand %p691_p11, %p1064_p13  ;;  %s694_s29 = sshll.u32 %s785_s15, 4  ;;  %s695_s29 = int_to_ptr.vmem [resolvable:$false] %s694_s29 }
  0x65   : > { %s696_s6 = scalar_lea.vmem %s695_s29, 512  ;;  %p697_p3 = scmp.lt.s32.totalorder %s986_s26, %s695_s29 }
  0x66   : > { %527 = vmatpush3.bf16.msra.mxu0 %v625_v3  ;;  %p693_p1 = pneg %p692_p4  ;;  %p698_p6 = scmp.lt.s32.totalorder %s696_s6, %s690_s8 }
  0x67   : > { %528 = vmatprep.subr.bf16.mxu0 %v783_v0 }
  0x68   : > { %p699_p8 = por %p698_p6, %p697_p3 }
  0x6a   : > { %529 = vmatpush3.bf16.msra.mxu0 %v626_v4  ;;  %p700_p0 = pnand %p699_p8, %p693_p1 }
  0x6b   : > { %530 = vmatprep.subr.bf16.mxu0 %v783_v0 }
  0x6e   : > { %531 = vmatpush3.bf16.msra.mxu0 %v627_v5 }
  0x6f   : > { %532 = vmatprep.subr.bf16.mxu0 %v783_v0 }
  0x72   : > { %533 = vmatpush3.bf16.msra.mxu0 %v628_v6 }
  0x73   : > { %534 = vmatprep.subr.bf16.mxu0 %v783_v0 }
  0x76   : > { %535 = vmatpush3.bf16.msra.mxu0 %v629_v7 }
  0x77   : > { %536 = vmatprep.subr.bf16.mxu0 %v783_v0 }
  0x7a   : > { %537 = vmatpush3.bf16.msra.mxu0 %v630_v8 }
  0x7d   : > { %539 = vmatmul.mubr.bf16.vlgmr.msra.gmra.mrb[0].mxu0 %v631_v9 }
 0x150   : > { %v355_v11 = vpop.f32.mrb[0].mxu0 }
 0x151   : > { %v356_v12 = vadd.f32 %v499_v10, %v355_v11  ;;  %v540_v13 = vpop.f32.mrb[1].mxu0 }
 0x152   : > { %v358_v14 = vpop.f32.mrb[2].mxu0 }
 0x153   : > { %v362_v15 = vmax.f32 %v356_v12, 0.0  ;;  %v359_v16 = vadd.f32 %v499_v10, %v358_v14  ;;  %v541_v17 = vpop.f32.mrb[3].mxu0 }
 0x155   : > { %364 = vst [vmem:[%s235_s11] sm:$0xff] %v362_v15  ;;  %v363_v18 = vmax.f32 %v359_v16, 0.0 }
 0x157   : > { %365 = vst [vmem:[%s235_s11 + $0x8] sm:$0xff] %v363_v18 }
 0x158   : > { %703 = shalt.err (!%p700_p0)
}
 0x159   : > { %s704_s9 = scalar_lea.hbm %s991_s7, 256  ;;  %s708_s25 = scalar_lea.hbm %s1043_s3, 512 }
 0x15a   : > { %p705_p2 = scmp.ne.s32.totalorder %s991_s7, %s704_s9  ;;  %p709_p5 = scmp.lt.u32.totalorder %s991_s7, %s1043_s3 }
 0x15b   : > { %p710_p9 = scmp.lt.u32.totalorder %s708_s25, %s704_s9  ;;  %p712_p11 = scmp.lt.u32.totalorder %s704_s9, %s991_s7 }
 0x15c   : > { %p706_p7 = pnand %p705_p2, %p1064_p13 }
 0x15d   : > { %p711_p10 = por %p710_p9, %p709_p5 }
 0x15e   : > { %p707_p12 = pneg %p706_p7 }
 0x15f   : > { %p713_p4 = por %p712_p11, %p711_p10 }
 0x161   : > { %p714_p1 = pnand %p713_p4, %p707_p12 }
 0x163   : > { %717 = shalt.err (!%p714_p1)
}
 0x164   : > { %s786_s11 = smov 128   ;;  %s787_s4 = smov 256  }
 0x165   : > { %s788_s5 = smov 8  }
 0x166   : > { %548 = dma.vmem_to_hbm [thread:$0]  (%p1064_p13), %s986_s26, 256, %s991_s7, %s367_s18, %s786_s11, %s787_s4, %s788_s5  }
 0x167 PF: > { %s397_s27 = sand.u32 1, %s756_s12   ;;  %p1065_p3 = scmp.ne.s32.totalorder %s1055_s24, 0 }
 0x168   : > { %p1066_p6 = scmp.ge.s32.totalorder %s776_s17, 2  ;;  %s398_s8 = scalar_lea.sflag [#allocation4], %s397_s27 }
 0x16a   : > { %p559_p8 = pnand %p1066_p6, %p1065_p3 }
 0x16c   : > { %751 = dma.done.wait (!%p559_p8), %s398_s8, 256  }
 0x16d   : > { %753 = vsyncadd (!%p559_p8), %s398_s8, 4294967040  ;;  %s20_s17 = sadd.s32 1, %s776_s17   ;;  %s1067_s12 = smov %s760_s13 }
 0x16e   : > { %p17_p0 = scmp.ge.s32.totalorder %s20_s17, 4   ;;  %s1068_s13 = smov %s764_s14 }
 0x16f   : > { %s1069_s14 = smov %s930_s21  ;;  %s1070_s15 = smov %s772_s16 }
 0x170   : > { %s1071_s16 = smov %s1073_s30  ;;  %19 = sbr.rel (!%p17_p0) target bundleno = 7 (0x7), region = 86 }
 0x177   :  { %403 = vsyncpa [#allocation3], 1 }
 0x178   :  { %405 = vsyncpa [#allocation3 + $0x1], 1 }
 0x179   :  { %406 = vsyncpa [#allocation6], 1 }
 0x17a   :  { %408 = vsyncpa [#allocation6 + $0x1], 1 }
 0x17b   :  { %409 = vsyncpa [#allocation4], 1 }
 0x17c   :  { %411 = vsyncpa [#allocation4 + $0x1], 1 }

</bundles_post_ra>
